<compile_context>
chip_gen: v7x
topology: tpu7x:2x2x1
jax: 0.10.0
libtpu: 0.0.40
codegen_flags: <defaults>
</compile_context>

<pallas_src>
from functools import partial

import jax
import jax.numpy as jnp
from jax.experimental import pallas as pl
from jax.experimental.pallas import tpu as pltpu


def _controller_kernel(x_ref, win_ref, whid_ref, wout_ref, out_ref):
    """Feature-major 3-layer tanh MLP.

    x_ref    : [2R, TB]  (batch on lanes), compute dtype (bf16 or f32)
    win_ref  : [C, 2R]   PyTorch [out, in] layout (LHS of W @ x)
    whid_ref : [C, C]
    wout_ref : [4, C]
    out_ref  : [4, TB]   f32, lane-dense
    """
    cd = win_ref.dtype                                  # MXU input dtype
    x = x_ref[...]                                      # [2R, TB]

    # hidden = tanh(W_in @ x)   -- single K=2R matmul (concat already folded)
    h = jnp.tanh(jnp.dot(win_ref[...], x,
                         preferred_element_type=jnp.float32))      # [C, TB] f32

    # hidden = tanh(W_hid @ hidden)
    h = jnp.tanh(jnp.dot(whid_ref[...], h.astype(cd),
                         preferred_element_type=jnp.float32))      # [C, TB] f32

    # out = tanh(W_out @ hidden)
    out_ref[...] = jnp.tanh(
        jnp.dot(wout_ref[...], h.astype(cd),
                preferred_element_type=jnp.float32)
    ).astype(out_ref.dtype)                                        # [4, TB]


def prepare_params(w_in, w_hidden, w_out, *, compute_dtype=jnp.bfloat16):
    """One-time parameter prep (done once at init, like nn.Module registration).

    Weights keep the PyTorch [out, in] layout (native LHS of the feature-major
    matmul) and are cast once to the MXU input dtype.  The compute dtype is
    carried by the param dtypes, so the forward pass cannot get out of sync.
    """
    return (jnp.asarray(w_in, compute_dtype),
            jnp.asarray(w_hidden, compute_dtype),
            jnp.asarray(w_out, compute_dtype))


def _pick_tile_b(B, tile_b):
    """Lane-dense batch tile: multiple of 128 (or the full B if B <= 128),
    capped at ceil(B/2) rounded up so the grid has >= 2 steps (v7x megacore)."""
    if B <= 128:
        return B
    tb = max(128, (min(tile_b, B) // 128) * 128)
    half_up = -(-(-(-B // 2)) // 128) * 128     # round_up(ceil(B/2), 128)
    return min(tb, half_up)


@partial(jax.jit, static_argnames=("tile_b",))
def integrated_controller_forward_fused(x_a, x_b, params, *, tile_b=2048):
    """x_a, x_b: [B, R].  params: output of `prepare_params`.
    Returns the fused outputs as a single lane-dense [4, B] float32 array."""
    w_in, w_hid, w_out = params
    cd = w_in.dtype
    assert w_hid.dtype == cd and w_out.dtype == cd, "param dtypes must match"

    B, R = x_a.shape
    C = w_hid.shape[0]
    n_out = w_out.shape[0]

    # Fold the concat and flip to feature-major once in XLA (layout plumbing):
    # [B, 2R] -> [2R, B], batch on the lane axis, cast to the MXU input dtype
    # (halves activation DMA bytes when bf16).
    x_t = jnp.concatenate([x_a, x_b], axis=-1).T.astype(cd)        # [2R, B]

    tb = _pick_tile_b(B, tile_b)
    grid = (pl.cdiv(B, tb),)

    x_spec = pl.BlockSpec((2 * R, tb), lambda i: (0, i))
    # Weights: constant index_map -> DMA'd once, resident in VMEM.
    w_specs = [pl.BlockSpec(w.shape, lambda i: (0, 0))
               for w in (w_in, w_hid, w_out)]
    out_spec = pl.BlockSpec((n_out, tb), lambda i: (0, i))

    flops = int(2 * B * (2 * R * C + C * C + C * n_out))
    transcendentals = int(B * (2 * C + n_out))
    bytes_accessed = int(x_t.size * x_t.dtype.itemsize
                         + sum(w.size * w.dtype.itemsize for w in params)
                         + B * n_out * 4)

    return pl.pallas_call(
        _controller_kernel,
        out_shape=jax.ShapeDtypeStruct((n_out, B), jnp.float32),
        grid=grid,
        in_specs=[x_spec] + w_specs,
        out_specs=out_spec,
        compiler_params=pltpu.CompilerParams(
            dimension_semantics=("parallel",)),
        cost_estimate=pl.CostEstimate(flops=flops,
                                      transcendentals=transcendentals,
                                      bytes_accessed=bytes_accessed),
    )(x_t, w_in, w_hid, w_out)


def integrated_controller_forward(x_a, x_b, params, **kwargs):
    """PyTorch-compatible interface: returns a tuple of four [B] arrays."""
    out = integrated_controller_forward_fused(x_a, x_b, params, **kwargs)
    return out[0], out[1], out[2], out[3]


def _init_params(key, reservoir_units, controller_units):
    """Deterministic init mimicking nn.Linear default: U(-1/sqrt(fan_in), +)."""
    k1, k2, k3 = jax.random.split(key, 3)
    input_size = reservoir_units * 2
    b_in = 1.0 / jnp.sqrt(jnp.float32(input_size))
    b_hid = 1.0 / jnp.sqrt(jnp.float32(controller_units))
    w_in = jax.random.uniform(k1, (controller_units, input_size),
                              jnp.float32, -b_in, b_in)
    w_hidden = jax.random.uniform(k2, (controller_units, controller_units),
                                  jnp.float32, -b_hid, b_hid)
    w_out = jax.random.uniform(k3, (4, controller_units),
                               jnp.float32, -b_hid, b_hid)
    return w_in, w_hidden, w_out


def _reference(x_a, x_b, w_in, w_hidden, w_out):
    x_comb = jnp.concatenate([x_a, x_b], axis=-1)
    h = jnp.tanh(x_comb @ w_in.T)
    h = jnp.tanh(h @ w_hidden.T)
    return jnp.tanh(h @ w_out.T)


if __name__ == "__main__":
    batch = 8
    reservoir_units = 16
    controller_units = 32

    key = jax.random.PRNGKey(0)
    kx1, kx2, kp, kb = jax.random.split(key, 4)
    x_a = jax.random.normal(kx1, (batch, reservoir_units), jnp.float32)
    x_b = jax.random.normal(kx2, (batch, reservoir_units), jnp.float32)
    w_in, w_hidden, w_out = _init_params(kp, reservoir_units, controller_units)
    ref = _reference(x_a, x_b, w_in, w_hidden, w_out)

    # ---- f32 path, tuple-compatible interface ----
    params_f32 = prepare_params(w_in, w_hidden, w_out,
                                compute_dtype=jnp.float32)
    outs = jax.block_until_ready(
        integrated_controller_forward(x_a, x_b, params_f32))
    for i in range(4):
        assert jnp.allclose(outs[i], ref[..., i], atol=1e-5, rtol=1e-5), (
            f"f32 mismatch in output {i}")

    # ---- larger batch: multi-step grid with a ragged last block ----
    big_b = 200
    xa_big = jax.random.normal(kb, (big_b, reservoir_units), jnp.float32)
    xb_big = -0.5 * xa_big + 0.25
    ref_big = _reference(xa_big, xb_big, w_in, w_hidden, w_out)
    out_big = jax.block_until_ready(
        integrated_controller_forward_fused(xa_big, xb_big, params_f32,
                                            tile_b=128))
    assert jnp.allclose(out_big.T, ref_big, atol=1e-5, rtol=1e-5), (
        "f32 tiled-grid mismatch")

    # ---- default bf16 MXU-input path (f32 accumulation + f32 tanh) ----
    params_bf16 = prepare_params(w_in, w_hidden, w_out)   # bf16 default
    out_bf16 = jax.block_until_ready(
        integrated_controller_forward_fused(x_a, x_b, params_bf16))
    assert jnp.allclose(out_bf16.T, ref, atol=5e-2, rtol=5e-2), "bf16 mismatch"

    print("KERNEL_OK")
</pallas_src>

<mosaic_0001>
module attributes {stable_mosaic.version = 11 : i64} {
  func.func @_controller_kernel(%arg0: i32, %arg1: memref<32x8xf32, #tpu.memory_space<vmem>>, %arg2: memref<32x32xf32, #tpu.memory_space<vmem>>, %arg3: memref<32x32xf32, #tpu.memory_space<vmem>>, %arg4: memref<4x32xf32, #tpu.memory_space<vmem>>, %arg5: memref<4x8xf32, #tpu.memory_space<vmem>>) attributes {dimension_semantics = [#tpu.dimension_semantics<parallel>], iteration_bounds = array<i64: 1>, scalar_prefetch = 0 : i64, scratch_operands = 0 : i64, tpu.core_type = #tpu.core_type<tc>, window_params = [{transform_indices = @transform_0, window_bounds = array<i64: 32, 8>}, {pipeline_mode = #tpu.pipeline_mode<synchronous>, transform_indices = @transform_1, window_bounds = array<i64: 32, 32>}, {pipeline_mode = #tpu.pipeline_mode<synchronous>, transform_indices = @transform_2, window_bounds = array<i64: 32, 32>}, {pipeline_mode = #tpu.pipeline_mode<synchronous>, transform_indices = @transform_3, window_bounds = array<i64: 4, 32>}, {transform_indices = @transform_4, window_bounds = array<i64: 4, 8>}]} {
    %c0 = arith.constant 0 : index
    %c0_0 = arith.constant 0 : index
    %0 = vector.load %arg1[%c0, %c0_0] : memref<32x8xf32, #tpu.memory_space<vmem>>, vector<32x8xf32>
    %c0_1 = arith.constant 0 : index
    %c0_2 = arith.constant 0 : index
    %1 = vector.load %arg2[%c0_1, %c0_2] : memref<32x32xf32, #tpu.memory_space<vmem>>, vector<32x32xf32>
    %cst = arith.constant dense<0.000000e+00> : vector<32x8xf32>
    %2 = tpu.matmul %1, %0, %cst {dimension_numbers = #tpu.dot_dimension_numbers<[1], [0], [0], [1], [0, 0, 1, 1], [], []>} : vector<32x32xf32>, vector<32x8xf32>, vector<32x8xf32> -> vector<32x8xf32>
    %3 = math.tanh %2 : vector<32x8xf32>
    %c0_3 = arith.constant 0 : index
    %c0_4 = arith.constant 0 : index
    %4 = vector.load %arg3[%c0_3, %c0_4] : memref<32x32xf32, #tpu.memory_space<vmem>>, vector<32x32xf32>
    %cst_5 = arith.constant dense<0.000000e+00> : vector<32x8xf32>
    %5 = tpu.matmul %4, %3, %cst_5 {dimension_numbers = #tpu.dot_dimension_numbers<[1], [0], [0], [1], [0, 0, 1, 1], [], []>} : vector<32x32xf32>, vector<32x8xf32>, vector<32x8xf32> -> vector<32x8xf32>
    %6 = math.tanh %5 : vector<32x8xf32>
    %c0_6 = arith.constant 0 : index
    %c0_7 = arith.constant 0 : index
    %7 = vector.load %arg4[%c0_6, %c0_7] : memref<4x32xf32, #tpu.memory_space<vmem>>, vector<4x32xf32>
    %cst_8 = arith.constant dense<0.000000e+00> : vector<4x8xf32>
    %8 = tpu.matmul %7, %6, %cst_8 {dimension_numbers = #tpu.dot_dimension_numbers<[1], [0], [0], [1], [0, 0, 1, 1], [], []>} : vector<4x32xf32>, vector<32x8xf32>, vector<4x8xf32> -> vector<4x8xf32>
    %9 = math.tanh %8 : vector<4x8xf32>
    %c0_9 = arith.constant 0 : index
    %c0_10 = arith.constant 0 : index
    %10 = vector.load %arg5[%c0_9, %c0_10] : memref<4x8xf32, #tpu.memory_space<vmem>>, vector<4x8xf32>
    tpu.vector_store %arg5[%c0_9, %c0_10], %9 {strides = array<i32>} : memref<4x8xf32, #tpu.memory_space<vmem>>, vector<4x8xf32>,
    return
  }
  func.func @transform_0(%arg0: i32) -> (i32, i32) {
    %c0_i32 = arith.constant 0 : i32
    %c0_i32_0 = arith.constant 0 : i32
    return %c0_i32, %arg0 : i32, i32
  }
  func.func @transform_1(%arg0: i32) -> (i32, i32) {
    %c0_i32 = arith.constant 0 : i32
    %c0_i32_0 = arith.constant 0 : i32
    %c0_i32_1 = arith.constant 0 : i32
    return %c0_i32, %c0_i32_0 : i32, i32
  }
  func.func @transform_2(%arg0: i32) -> (i32, i32) {
    %c0_i32 = arith.constant 0 : i32
    %c0_i32_0 = arith.constant 0 : i32
    %c0_i32_1 = arith.constant 0 : i32
    return %c0_i32, %c0_i32_0 : i32, i32
  }
  func.func @transform_3(%arg0: i32) -> (i32, i32) {
    %c0_i32 = arith.constant 0 : i32
    %c0_i32_0 = arith.constant 0 : i32
    %c0_i32_1 = arith.constant 0 : i32
    return %c0_i32, %c0_i32_0 : i32, i32
  }
  func.func @transform_4(%arg0: i32) -> (i32, i32) {
    %c0_i32 = arith.constant 0 : i32
    %c0_i32_0 = arith.constant 0 : i32
    return %c0_i32, %arg0 : i32, i32
  }
}

</mosaic_0001>

<bundles_post_ra>
// kernel: integrated_controller_forward_fused.1
= control target key start
LH: loop header
LB: loop body
LE: loop exit
PB: predicated region body
PF: predicated region fallthrough
CT: control target
= control target key end

     0   :  { %vm26_vm0 = vcmask 261120   ;;  %s550_s0 = inlined_call_operand.vmem [shape: f32[32,8], index: 0, kind: input, shape index: {}]   ;;  %s551_s1 = inlined_call_operand.vmem [shape: f32[32,32], index: 1, kind: input, shape index: {}]   ;;  %s552_s2 = inlined_call_operand.vmem [shape: f32[32,32], index: 2, kind: input, shape index: {}]   ;;  %s553_s3 = inlined_call_operand.vmem [shape: f32[4,32], index: 3, kind: input, shape index: {}]   ;;  %s554_s4 = inlined_call_operand.hbm [shape: f32[4,8], index: 4, kind: output, shape index: {}]  }
   0x1   :  { %v18_v0 = vld [vmem:[%s550_s0] sm:$0xff]  ;;  %v19_v1 = vld [vmem:[%s550_s0 + $0x8] sm:$0xff]  ;;  %v20_v2 = vld [vmem:[%s550_s0 + $0x10] sm:$0xff] }
   0x2   :  { %v393_v3 = vpack.c.bf16 %v19_v1, %v18_v0  ;;  %v21_v4 = vld [vmem:[%s550_s0 + $0x18] sm:$0xff]  ;;  %v22_v5 = vld [vmem:[%s551_s1] sm:$0xff] }
   0x3   :  { %v397_v6 = vpack.c.bf16 %v21_v4, %v20_v2  ;;  %362 = vmatprep.mubr.msk.f32.mxu0 %vm26_vm0, %v22_v5 }
   0x4   :  { %9 = vsyncpa [#allocation3], 0  ;;  %394 = vmatprep.subr.bf16.mxu0 %v393_v3  ;;  %v23_v7 = vld [vmem:[%s551_s1 + $0x8] sm:$0xff]  ;;  %v24_v8 = vld [vmem:[%s551_s1 + $0x10] sm:$0xff]  ;;  %v461_v24 = vmov 0.0|0.0   ;;  %vm462_vm1 = vmmov 0  }
   0x5   :  { %396 = vmatpush3.bf16.msra.mxu0 %v393_v3  ;;  %v25_v9 = vld [vmem:[%s551_s1 + $0x18] sm:$0xff]  ;;  %v128_v10 = vld [vmem:[%s552_s2] sm:$0xff]  ;;  %v129_v21 = vld [vmem:[%s552_s2 + $0x8] sm:$0xff]  ;;  %v463_v25 = vmov 0.0   ;;  %s464_s12 = smov [#allocation2]   ;;  %vm308_vm2 = vcmask 60416  }
   0x6   :  { %398 = vmatprep.subr.bf16.mxu0 %v397_v6  ;;  %376 = vmatprep.mubr.msk.f32.mxu1 %vm26_vm0, %v128_v10  ;;  %v130_v22 = vld [vmem:[%s552_s2 + $0x10] sm:$0xff]  ;;  %v131_v23 = vld [vmem:[%s552_s2 + $0x18] sm:$0xff]  ;;  %v233_v36 = vld [vmem:[%s553_s3] sm:$0xf]  ;;  %s316_s13 = sshll.u32 %s464_s12, 4  ;;  %s317_s13 = int_to_ptr.vmem [resolvable:$true] %s316_s13 }
   0x7   :  { %s437_s14 = scalar_lea.vmem %s317_s13, 64  ;;  %p442_p1 = scmp.lt.s32.totalorder %s317_s13, %s317_s13 }
   0x8   :  { %p438_p0 = scmp.ne.s32.totalorder %s317_s13, %s437_s14  ;;  %p443_p2 = scmp.lt.s32.totalorder %s437_s14, %s437_s14 }
   0x9   :  { %400 = vmatpush3.bf16.msra.mxu0 %v397_v6 }
   0xa   :  { %409 = vmatprep.subr.bf16.mxu0 %v461_v24  ;;  %p444_p3 = por %p443_p2, %p442_p1 }
   0xc   :  { %363 = vmatmul.mubr.msk.f32.vlgmr.msra.gmra.mrb[0].mxu0 %vm26_vm0, %v23_v7  ;;  %p445_p4 = pnand %p444_p3, %p438_p0 }
   0xd   :  { %365 = vmatprep.mubr.msk.f32.mxu0 %vm26_vm0, %v24_v8 }
  0x10   :  { %366 = vmatmul.mubr.msk.f32.gmra.mrb[2].mxu0 %vm26_vm0, %v25_v9 }
  0x11   :  { %390 = vmatprep.mubr.msk.f32.mxu0 %vm462_vm1, %v463_v25 }
  0xdf   :  { %v364_v11 = vpop.f32.mrb[0].mxu0 }
  0xe0   :  { %419 = vtanh.f32 %v364_v11  ;;  %v105_v12 = vpop.f32.mrb[1].mxu0 }
  0xe1   :  { %421 = vtanh.f32 %v105_v12 }
  0xe3   :  { %v367_v13 = vpop.f32.mrb[2].mxu0 }
  0xe4   :  { %423 = vtanh.f32 %v367_v13  ;;  %v115_v14 = vpop.f32.mrb[3].mxu0 }
  0xe5   :  { %425 = vtanh.f32 %v115_v14 }
  0xea   :  { %v420_v15 = vpop.eup %419 }
  0xeb   :  { %v422_v16 = vpop.eup %421 }
  0xec   :  { %v401_v17 = vpack.c.bf16 %v420_v15, %v422_v16 }
  0xee   :  { %v424_v18 = vpop.eup %423  ;;  %402 = vmatprep.subr.bf16.mxu1 %v401_v17 }
  0xef   :  { %v426_v19 = vpop.eup %425  ;;  %404 = vmatpush3.bf16.msra.mxu1 %v401_v17 }
  0xf0   :  { %v405_v20 = vpack.c.bf16 %v424_v18, %v426_v19 }
  0xf2   :  { %406 = vmatprep.subr.bf16.mxu1 %v405_v20 }
  0xf3   :  { %408 = vmatpush3.bf16.msra.mxu1 %v405_v20 }
  0xf6   :  { %377 = vmatmul.mubr.msk.f32.vlgmr.msra.gmra.mrb[0].mxu1 %vm26_vm0, %v129_v21 }
  0xf7   :  { %379 = vmatprep.mubr.msk.f32.mxu1 %vm26_vm0, %v130_v22 }
  0xfa   :  { %380 = vmatmul.mubr.msk.f32.gmra.mrb[2].mxu1 %vm26_vm0, %v131_v23 }
 0x1c9   :  { %v378_v26 = vpop.f32.mrb[0].mxu1 }
 0x1ca   :  { %427 = vtanh.f32 %v378_v26  ;;  %v210_v27 = vpop.f32.mrb[1].mxu1 }
 0x1cb   :  { %429 = vtanh.f32 %v210_v27 }
 0x1cd   :  { %v381_v28 = vpop.f32.mrb[2].mxu1 }
 0x1ce   :  { %431 = vtanh.f32 %v381_v28  ;;  %v220_v29 = vpop.f32.mrb[3].mxu1 }
 0x1cf   :  { %433 = vtanh.f32 %v220_v29 }
 0x1d4   :  { %v428_v30 = vpop.eup %427 }
 0x1d5   :  { %v430_v31 = vpop.eup %429 }
 0x1d6   :  { %v410_v32 = vpack.c.bf16 %v428_v30, %v430_v31 }
 0x1d8   :  { %v432_v33 = vpop.eup %431  ;;  %411 = vmatpush3.bf16.msra.mxu0 %v410_v32 }
 0x1d9   :  { %v434_v34 = vpop.eup %433  ;;  %412 = vmatprep.subr.bf16.mxu0 %v461_v24 }
 0x1da   :  { %v413_v35 = vpack.c.bf16 %v432_v33, %v434_v34 }
 0x1dc   :  { %414 = vmatpush3.bf16.msra.mxu0 %v413_v35 }
 0x1df   :  { %391 = vmatmul.mubr.msk.f32.vlgmr.msra.gmra.mrb[4].mxu0 %vm26_vm0, %v233_v36 }
 0x2b2   :  { %v303_v37 = vpop.f32.mrb[4].mxu0 }
 0x2b3   :  { %435 = vtanh.f32 %v303_v37  ;;  %v392_v38 = vpop.f32.mrb[5].mxu0 }
 0x2bd   :  { %v436_v39 = vpop.eup %435 }
 0x2be   :  { %309 = vst.msk [vmem:[#allocation2] sm:$0xf] %vm308_vm2, %v436_v39 }
 0x2bf   :  { %448 = shalt.err (!%p445_p4)
}
 0x2c0   :  { %s449_s16 = scalar_lea.hbm %s554_s4, 64 }
 0x2c1   :  { %p450_p5 = scmp.ne.s32.totalorder %s554_s4, %s449_s16  ;;  %p453_p6 = scmp.lt.u32.totalorder %s449_s16, %s554_s4 }
 0x2c3   :  { %p455_p7 = pnand %p453_p6, %p450_p5 }
 0x2c5   :  { %458 = shalt.err (!%p455_p7)
}
 0x2c6   :  { %319 = dma.vmem_to_hbm [thread:$0]  %s317_s13, 64, %s554_s4, [#allocation3]  }
 0x2c7   :  { %459 = dma.done.wait [#allocation3], 64  }
 0x2c8   :  { %460 = vsyncadd [#allocation3], 4294967232 }
 0x2c9   :  { %323 = vsyncpa [#allocation3], 1 }

</bundles_post_ra>
